<compile_context>
chip_gen: v7x
topology: tpu7x:2x2x1
jax: 0.10.0
libtpu: 0.0.40
codegen_flags: <defaults>
</compile_context>

<pallas_src>
import jax
import jax.numpy as jnp
from jax.experimental import pallas as pl
from jax.experimental.pallas import tpu as pltpu

PAD_TOKEN_ID = 0


def _last_weighted_kernel(mw_ref, hid_ref, out_ref):
    """One grid step: weighted, normalized sum over S for one (tile_b, tile_h) tile.

    mw_ref:  (tile_b, 1, S)      f32   mask * (arange(S)+1) / den  (inv_den folded)
    hid_ref: (tile_b, S, tile_h) bf16  streamed, contiguous hidden-state slab
    out_ref: (tile_b, 1, tile_h) f32
    """
    hid = hid_ref[...].astype(jnp.float32)        # single promotion; contraction on MXU
    out_ref[...] = jnp.einsum(
        "bqs,bsh->bqh", mw_ref[...], hid,
        precision=jax.lax.Precision.HIGHEST,
        preferred_element_type=jnp.float32,
    )


def _vmem_capacity_bytes():
    try:
        cap = getattr(pltpu.get_tpu_info(), "vmem_capacity_bytes", None)
        if cap:
            return int(cap)
    except Exception:
        pass
    return 64 << 20   # conservative default (v7x-sized physical VMEM)


def _choose_tiles(B, S, H, elem_bytes, per_buffer_bytes):
    """Pick (tile_b, tile_h).

    Prefer B-major contiguous slabs spanning the full H width; only tile H when
    even a single (1, S, H) slab overflows the per-buffer budget.  Keep >= 2
    total grid steps when the shape allows so the 'parallel' axes can be
    sharded across both v7x TensorCores.
    """
    def fits(tb, th):
        return tb * S * th * elem_bytes <= per_buffer_bytes

    b_divs = [d for d in range(1, B + 1) if B % d == 0]
    tile_h = H
    fitting = [d for d in b_divs if fits(d, H)]
    if fitting:
        tile_b = max(fitting)
    else:
        # (1, S, H) slab too large: fall back to lane-aligned H tiling.
        # TODO(synk): add an S-tiling accumulator fallback for extreme S.
        tile_b = 1
        h_cands = [t for t in range(128, H + 1, 128) if H % t == 0 and fits(1, t)]
        if h_cands:
            tile_h = max(h_cands)
        elif H % 128 == 0:
            tile_h = 128
        else:
            tile_h = H   # unaligned H: keep full width, rely on vmem_limit

    # Guarantee >= 2 grid steps for megacore whenever the shape allows.
    steps = (B // tile_b) * (H // tile_h)
    if steps < 2:
        smaller_b = [d for d in b_divs if d < tile_b]
        if smaller_b:
            tile_b = max(smaller_b)            # keeps slabs contiguous
        elif tile_h == H and H % 256 == 0:
            tile_h = H // 2
    return tile_b, tile_h


def last_weighted_pool(input_ids, last_hidden_state, *,
                       pad_token_id=PAD_TOKEN_ID,
                       tile_b=None, tile_h=None):
    """Pallas implementation of LastWeightedEmbedder pooling."""
    B, S, H = last_hidden_state.shape
    elem_bytes = jnp.dtype(last_hidden_state.dtype).itemsize

    # ---- generation-aware VMEM budget ----
    vmem_cap = _vmem_capacity_bytes()              # 128 MiB v5e/v6e, 64 MiB v7x
    usable = int(vmem_cap * 0.75)                  # ~96 MiB / ~48 MiB
    per_buffer_bytes = max(usable // 6, 2 << 20)   # one streamed bf16 slab

    if tile_b is None or tile_h is None:
        auto_b, auto_h = _choose_tiles(B, S, H, elem_bytes, per_buffer_bytes)
        tile_b = auto_b if tile_b is None else tile_b
        tile_h = auto_h if tile_h is None else tile_h
    assert B % tile_b == 0 and H % tile_h == 0

    # ---- hoisted, grid-invariant prep (plain JAX; O(B*S) work) ----
    mask = (input_ids != pad_token_id).astype(jnp.float32)          # (B, S)
    w = jnp.arange(S, dtype=jnp.float32) + 1.0                      # (S,)
    mw = mask * w[None, :]                                          # (B, S)
    den = jnp.sum(mw, axis=-1, keepdims=True)                       # (B, 1)
    # Fold 1/den into the weights.  Rows that are entirely padding give NaN,
    # matching the PyTorch module's 0/0 behavior (semantics preserved).
    mw_scaled = (mw / den)[:, None, :]                              # (B, 1, S) f32

    # ---- VMEM estimate / compiler params ----
    hid_block = tile_b * S * tile_h * elem_bytes
    est_vmem = (2 * hid_block                    # double-buffered bf16 hid slabs
                + tile_b * S * tile_h * 4        # in-kernel f32 promotion
                + 2 * tile_b * S * 4             # mw blocks
                + 2 * tile_b * tile_h * 4)       # output blocks
    vmem_limit = min(max(int(est_vmem * 1.5) + (1 << 20), 16 << 20), usable)

    grid = (B // tile_b, H // tile_h)

    out3 = pl.pallas_call(
        _last_weighted_kernel,
        out_shape=jax.ShapeDtypeStruct((B, 1, H), jnp.float32),
        grid_spec=pltpu.PrefetchScalarGridSpec(
            num_scalar_prefetch=0,
            grid=grid,
            in_specs=[
                pl.BlockSpec((tile_b, 1, S), lambda i, j: (i, 0, 0)),        # mw
                pl.BlockSpec((tile_b, S, tile_h), lambda i, j: (i, 0, j)),   # hidden
            ],
            out_specs=pl.BlockSpec((tile_b, 1, tile_h), lambda i, j: (i, 0, j)),
        ),
        compiler_params=pltpu.CompilerParams(
            dimension_semantics=("parallel", "parallel"),
            vmem_limit_bytes=vmem_limit,
        ),
    )(mw_scaled, last_hidden_state)
    return out3.reshape(B, H)


def reference_pool(input_ids, last_hidden_state, *, pad_token_id=PAD_TOKEN_ID):
    B, S, H = last_hidden_state.shape
    hid = last_hidden_state.astype(jnp.float32)
    mask = (input_ids != pad_token_id).astype(jnp.float32)              # (B, S)
    w = jnp.arange(S, dtype=jnp.float32) + 1.0                          # (S,)
    emb = hid * mask[:, :, None] * w[None, :, None]
    return jnp.sum(emb, axis=1) / jnp.sum(w[None, :] * mask, axis=-1, keepdims=True)


if __name__ == "__main__":
    key = jax.random.PRNGKey(0)
    k_ids, k_emb = jax.random.split(key)

    B, S, H, VOCAB = 4, 16, 256, 97

    # deterministic "encoder" params: embedding table standing in for the
    # pretrained model's last-hidden-state producer.
    embedding_table = (
        jax.random.normal(k_emb, (VOCAB, H), dtype=jnp.float32) * 0.02
    )

    # input ids with trailing padding on some rows (pad_token_id = 0)
    input_ids = jax.random.randint(k_ids, (B, S), minval=1, maxval=VOCAB,
                                   dtype=jnp.int32)
    pad_lens = jnp.array([0, 3, 7, 12], dtype=jnp.int32)                # per-row padding
    pos = jnp.arange(S, dtype=jnp.int32)[None, :]
    input_ids = jnp.where(pos < (S - pad_lens)[:, None], input_ids, PAD_TOKEN_ID)

    # synthetic encoder(input_ids).last_hidden_state, streamed as bf16
    last_hidden_state = embedding_table[input_ids].astype(jnp.bfloat16)  # (B, S, H)

    out = last_weighted_pool(input_ids, last_hidden_state,
                             pad_token_id=PAD_TOKEN_ID)
    out = jax.block_until_ready(out)

    ref = reference_pool(input_ids, last_hidden_state, pad_token_id=PAD_TOKEN_ID)
    assert out.shape == (B, H)
    assert jnp.allclose(out, ref, atol=1e-5, rtol=1e-4), "mismatch vs reference"

    print("KERNEL_OK")
</pallas_src>

<mosaic_0001>
module attributes {stable_mosaic.version = 11 : i64} {
  func.func @_last_weighted_kernel(%arg0: i32, %arg1: i32, %arg2: memref<2x1x16xf32, #tpu.memory_space<vmem>>, %arg3: memref<2x16x256xbf16, #tpu.memory_space<vmem>>, %arg4: memref<2x1x256xf32, #tpu.memory_space<vmem>>) attributes {dimension_semantics = [#tpu.dimension_semantics<parallel>, #tpu.dimension_semantics<parallel>], iteration_bounds = array<i64: 2, 1>, scalar_prefetch = 0 : i64, scratch_operands = 0 : i64, tpu.core_type = #tpu.core_type<tc>, window_params = [{transform_indices = @transform_0, window_bounds = array<i64: 2, 1, 16>}, {transform_indices = @transform_1, window_bounds = array<i64: 2, 16, 256>}, {transform_indices = @transform_2, window_bounds = array<i64: 2, 1, 256>}]} {
    %c0 = arith.constant 0 : index
    %c0_0 = arith.constant 0 : index
    %c0_1 = arith.constant 0 : index
    %0 = vector.load %arg3[%c0, %c0_0, %c0_1] : memref<2x16x256xbf16, #tpu.memory_space<vmem>>, vector<2x16x256xbf16>
    %1 = arith.extf %0 : vector<2x16x256xbf16> to vector<2x16x256xf32>
    %c0_2 = arith.constant 0 : index
    %c0_3 = arith.constant 0 : index
    %c0_4 = arith.constant 0 : index
    %2 = vector.load %arg2[%c0_2, %c0_3, %c0_4] : memref<2x1x16xf32, #tpu.memory_space<vmem>>, vector<2x1x16xf32>
    "tpu.trace_start"() <{level = 10 : i32, message = "bqs,bsh->bqh"}> : () -> ()
    %cst = arith.constant dense<0.000000e+00> : vector<2x1x256xf32>
    %3 = tpu.matmul %2, %1, %cst {dimension_numbers = #tpu.dot_dimension_numbers<[2], [1], [1], [2], [0, 0, 0, 1, 1, 2], [0], [0]>, precision = #tpu.contract_precision<fp32>} : vector<2x1x16xf32>, vector<2x16x256xf32>, vector<2x1x256xf32> -> vector<2x1x256xf32>
    "tpu.trace_stop"() : () -> ()
    %c0_5 = arith.constant 0 : index
    %c0_6 = arith.constant 0 : index
    %c0_7 = arith.constant 0 : index
    %4 = vector.load %arg4[%c0_5, %c0_6, %c0_7] : memref<2x1x256xf32, #tpu.memory_space<vmem>>, vector<2x1x256xf32>
    tpu.vector_store %arg4[%c0_5, %c0_6, %c0_7], %3 {strides = array<i32>} : memref<2x1x256xf32, #tpu.memory_space<vmem>>, vector<2x1x256xf32>,
    return
  }
  func.func @transform_0(%arg0: i32, %arg1: i32) -> (i32, i32, i32) {
    %c0_i32 = arith.constant 0 : i32
    %c0_i32_0 = arith.constant 0 : i32
    %c0_i32_1 = arith.constant 0 : i32
    return %arg0, %c0_i32, %c0_i32_0 : i32, i32, i32
  }
  func.func @transform_1(%arg0: i32, %arg1: i32) -> (i32, i32, i32) {
    %c0_i32 = arith.constant 0 : i32
    %c0_i32_0 = arith.constant 0 : i32
    return %arg0, %c0_i32, %arg1 : i32, i32, i32
  }
  func.func @transform_2(%arg0: i32, %arg1: i32) -> (i32, i32, i32) {
    %c0_i32 = arith.constant 0 : i32
    %c0_i32_0 = arith.constant 0 : i32
    return %arg0, %c0_i32, %arg1 : i32, i32, i32
  }
}

</mosaic_0001>

<bundles_post_ra>
// kernel: tpu_custom_call.1
= control target key start
LH: loop header
LB: loop body
LE: loop exit
PB: predicated region body
PF: predicated region fallthrough
CT: control target
= control target key end

     0   :  { %7 = vsyncpa [#allocation3], 0  ;;  %s2027_s0 = inlined_call_operand.hbm [shape: f32[4,1,16], index: 0, kind: input, shape index: {}]   ;;  %s2028_s1 = inlined_call_operand.hbm [shape: bf16[4,16,256], index: 1, kind: input, shape index: {}]   ;;  %s2029_s2 = inlined_call_operand.hbm [shape: f32[4,1,256], index: 2, kind: output, shape index: {}]  }
   0x1   :  { %9 = vsyncpa [#allocation3 + $0x1], 0 }
   0x2   :  { %10 = vsyncpa [#allocation6], 0 }
   0x3   :  { %12 = vsyncpa [#allocation6 + $0x1], 0 }
   0x4   :  { %13 = vsyncpa [#allocation4], 0 }
   0x5   :  { %15 = vsyncpa [#allocation4 + $0x1], 0  ;;  %s1709_s9 = smov 0   ;;  %s1711_s10 = smov 0  }
   0x6   :  { %s1713_s11 = smov 0   ;;  %s1715_s12 = smov 0  }
   0x7   :  { %s1717_s13 = smov 0   ;;  %s1719_s14 = smov 0  }
   0x8 LB: > { %s1350_s15 = sadd.s32 4294967295, %s1681_s14   ;;  %s1351_s16 = sadd.s32 4294967294, %s1681_s14   ;;  %s1681_s14 = sphi %s1719_s14, %s21_s14   ;;  %s1677_s13 = sphi %s1717_s13, %s2047_s13   ;;  %s1673_s12 = sphi %s1715_s12, %s2046_s12   ;;  %s1669_s11 = sphi %s1713_s11, %s2045_s11   ;;  %s1665_s10 = sphi %s1711_s10, %s2044_s10   ;;  %s1661_s9 = sphi %s1709_s9, %s2043_s9  }
   0x9   : > { %s33_s17 = sadd.s32 1, %s1677_s13  ;;  %s40_s18 = sadd.s32 1, %s1669_s11 }
   0xa   : > { %p35_p0 = scmp.ge.s32.totalorder %s33_s17, 2  ;;  %p47_p1 = scmp.ne.s32.totalorder %s1669_s11, %s1665_s10 }
   0xb   : > { %p48_p2 = scmp.eq.s32.totalorder %s1681_s14, 0  ;;  %p53_p3 = scmp.ne.s32.totalorder %s1665_s10, %s1661_s9 }
   0xc   : > { %s2049_s17 = smov (%p35_p0, %s33_s17), 0  ;;  %p54_p5 = scmp.eq.s32.totalorder %s1350_s15, 0 }
   0xd   : > { %p1750_p4 = por %p48_p2, %p47_p1  ;;  %s37_s20 = ssub.s32 %s1677_s13, %s2049_s17 }
   0xe   : > { %p107_p6 = scmp.eq.s32.totalorder %s1350_s15, 1  ;;  %p38_p7 = scmp.eq.s32.totalorder %s37_s20, 0 }
   0xf   : > { %p1756_p8 = por %p54_p5, %p53_p3  ;;  %p113_p10 = scmp.eq.s32.totalorder %s1351_s16, 1 }
  0x10   : > { %p1760_p9 = por %p107_p6, %p47_p1  ;;  %p1473_p13 = scmp.lt.s32.totalorder %s1681_s14, 2 }
  0x11   : > { %s2033_s21 = scalar_select %p1756_p8, 1, 0 }
  0x12   : > { %s2034_s22 = scalar_select %p1760_p9, 1, 0 }
  0x13   : > { %s1765_s23 = scalar_select %p38_p7, %s1669_s11, %s40_s18  }
  0x14   : > { %p1767_p11 = por %p113_p10, %p53_p3  ;;  %s1774_s25 = sand.u32 1, %s1669_s11  }
  0x15   : > { %s1354_s26 = sshll.u32 %s1774_s25, 1  ;;  %s1371_s27 = sshll.u32 %s1677_s13, 5 }
  0x16   : > { %s2035_s24 = scalar_select %p1767_p11, 1, 0 }
  0x17   : > { %s1781_s30 = scalar_lea.hbm %s2027_s0, %s1371_s27  ;;  %s137_s3 = scalar_lea.vmem [#allocation2], %s1354_s26 }
  0x18   : > { %s144_s4 = sshll.u32 %s137_s3, 4  ;;  %p1787_p0 = pnand %p1473_p13, %p1750_p4  ;;  %s1783_s4 = int_to_ptr.vmem [resolvable:$true] %s144_s4 }
  0x19   : > { %s134_s6 = scalar_lea.sflag [#allocation3], %s1774_s25  ;;  %s1535_s7 = scalar_lea.hbm %s1781_s30, 32 }
  0x1a   : > { %p1536_p2 = scmp.ne.s32.totalorder %s1781_s30, %s1535_s7  ;;  %p1537_p3 = pneg %p1787_p0 }
  0x1b   : > { %s1540_s16 = scalar_lea.hbm %s2027_s0, 64  ;;  %p1541_p4 = scmp.lt.u32.totalorder %s1781_s30, %s2027_s0 }
  0x1c   : > { %p1538_p5 = pnand %p1537_p3, %p1536_p2  ;;  %p1542_p7 = scmp.lt.u32.totalorder %s1540_s16, %s1535_s7 }
  0x1d   : > { %p1544_p13 = scmp.lt.u32.totalorder %s1535_s7, %s1781_s30 }
  0x1e   : > { %p1539_p6 = pneg %p1538_p5  ;;  %p1543_p10 = por %p1542_p7, %p1541_p4 }
  0x20   : > { %p1545_p12 = por %p1544_p13, %p1543_p10 }
  0x22   : > { %p1546_p1 = pnand %p1545_p12, %p1539_p6 }
  0x24   : > { %1549 = shalt.err (!%p1546_p1)
}
  0x25   : > { %s1550_s20 = scalar_lea.vmem %s1783_s4, 32  ;;  %s1683_s26 = smov [#allocation2]  }
  0x26   : > { %p1551_p2 = scmp.ne.s32.totalorder %s1783_s4, %s1550_s20  ;;  %s1555_s27 = sshll.u32 %s1683_s26, 4  ;;  %s1556_s27 = int_to_ptr.vmem [resolvable:$false] %s1555_s27 }
  0x27   : > { %s1557_s28 = scalar_lea.vmem %s1556_s27, 64  ;;  %p1558_p9 = scmp.lt.s32.totalorder %s1783_s4, %s1556_s27 }
  0x28   : > { %p1553_p5 = pnand %p1551_p2, %p1537_p3  ;;  %p1559_p4 = scmp.lt.s32.totalorder %s1557_s28, %s1550_s20 }
  0x2a   : > { %p1554_p11 = pneg %p1553_p5  ;;  %p1560_p7 = por %p1559_p4, %p1558_p9 }
  0x2c   : > { %p1561_p10 = pnand %p1560_p7, %p1554_p11 }
  0x2e   : > { %1564 = shalt.err (!%p1561_p10)
}
  0x2f   : > { %s1684_s29 = smov 16   ;;  %s1685_s3 = smov 1  }
  0x30   : > { %1465 = dma.hbm_to_vmem [thread:$0]  (!%p1787_p0), %s1781_s30, 32, %s1783_s4, %s134_s6, %s1684_s29, %s1684_s29, %s1685_s3  }
  0x31   : > { %p176_p12 = scmp.lt.s32.totalorder %s1681_s14, 3  ;;  %s1357_s7 = sshll.u32 %s1774_s25, 5 }
  0x32   : > { %s1373_s8 = sshll.u32 %s1677_s13, 9  ;;  %p2037_p9 = scmp.ge.s32.totalorder %s1681_s14, 1 }
  0x33   : > { %s1832_s19 = scalar_lea.hbm %s2028_s1, %s1373_s8  ;;  %s158_s20 = scalar_lea.vmem [#allocation5], %s1357_s7 }
  0x34   : > { %p1825_p11 = pnand %p2037_p9, %p176_p12  ;;  %s168_s26 = sshll.u32 %s158_s20, 4  ;;  %s1834_s26 = int_to_ptr.vmem [resolvable:$true] %s168_s26 }
  0x35   : > { %s155_s30 = scalar_lea.sflag [#allocation6], %s1774_s25  ;;  %s1565_s4 = scalar_lea.hbm %s1832_s19, 512 }
  0x36   : > { %p1566_p1 = scmp.ne.s32.totalorder %s1832_s19, %s1565_s4  ;;  %s1570_s28 = scalar_lea.hbm %s2028_s1, 1024 }
  0x37   : > { %p1571_p2 = scmp.lt.u32.totalorder %s1832_s19, %s2028_s1  ;;  %p1572_p5 = scmp.lt.u32.totalorder %s1570_s28, %s1565_s4 }
  0x38   : > { %p1568_p6 = pnand %p1566_p1, %p1537_p3  ;;  %p1574_p7 = scmp.lt.u32.totalorder %s1565_s4, %s1832_s19 }
  0x39   : > { %p1573_p4 = por %p1572_p5, %p1571_p2 }
  0x3a   : > { %p1569_p13 = pneg %p1568_p6 }
  0x3b   : > { %p1575_p10 = por %p1574_p7, %p1573_p4 }
  0x3d   : > { %p1576_p12 = pnand %p1575_p10, %p1569_p13 }
  0x3f   : > { %1579 = shalt.err (!%p1576_p12)
}
  0x40   : > { %s1580_s7 = scalar_lea.vmem %s1834_s26, 512  ;;  %s1686_s8 = smov [#allocation5]  }
  0x41   : > { %p1581_p9 = scmp.ne.s32.totalorder %s1834_s26, %s1580_s7  ;;  %s1585_s16 = sshll.u32 %s1686_s8, 4  ;;  %s1586_s16 = int_to_ptr.vmem [resolvable:$false] %s1585_s16 }
  0x42   : > { %s1587_s18 = scalar_lea.vmem %s1586_s16, 1024  ;;  %p1588_p8 = scmp.lt.s32.totalorder %s1834_s26, %s1586_s16 }
  0x43   : > { %p1583_p1 = pnand %p1581_p9, %p1537_p3  ;;  %p1589_p2 = scmp.lt.s32.totalorder %s1587_s18, %s1580_s7 }
  0x45   : > { %p1584_p6 = pneg %p1583_p1  ;;  %p1590_p5 = por %p1589_p2, %p1588_p8 }
  0x47   : > { %p1591_p4 = pnand %p1590_p5, %p1584_p6 }
  0x49   : > { %1594 = shalt.err (!%p1591_p4)
}
  0x4a   : > { %s1687_s20 = smov 128   ;;  %s1688_s4 = smov 8  }
  0x4b   : > { %1468 = dma.hbm_to_vmem [thread:$0]  (!%p1787_p0), %s1832_s19, 512, %s1834_s26, %s155_s30, %s1687_s20, %s1687_s20, %s1688_s4  }
  0x4c   : > { %180 = sbr.rel (%p1825_p11) target bundleno = 378 (0x17a), region = 28  ;;  %s1865_s6 = sand.u32 (!%p1825_p11), 1, %s1665_s10  }
  0x4d   : > { %s1362_s27 = sshll.u32 (!%p1825_p11), %s1865_s6, 1  ;;  %s183_s28 = scalar_lea.sflag (!%p1825_p11), [#allocation3], %s1865_s6 }
  0x4e   : > { %s186_s29 = scalar_lea.vmem (!%p1825_p11), [#allocation2], %s1362_s27  ;;  %p2039_p8 = scmp.ne.s32.totalorder (!%p1825_p11), %s2033_s21, 0 }
  0x53   : > { %1648 = dma.done.wait (%p2039_p8), %s183_s28, 32  }
  0x54   : > { %1650 = vsyncadd (%p2039_p8), %s183_s28, 4294967264  ;;  %s1363_s25 = sshll.u32 %s1865_s6, 5  ;;  %s192_s5 = scalar_lea.sflag [#allocation6], %s1865_s6 }
  0x55   : > { %s195_s15 = scalar_lea.vmem [#allocation5], %s1363_s25 }
  0x56   : > { %1652 = dma.done.wait (%p2039_p8), %s192_s5, 512  }
  0x57   : > { %1654 = vsyncadd (%p2039_p8), %s192_s5, 4294966784  ;;  %v1689_v0 = vmov 0.0   ;;  %v226_v1 = vld [vmem:[%s195_s15] sm:$0xff]  ;;  %v227_v2 = vld [vmem:[%s195_s15 + $0x8] sm:$0xff]  ;;  %vm240_vm0 = vcmask 130048   ;;  %s1364_s21 = sshll.u32 %s1865_s6, 2 }
  0x58   : > { %308 = vmatprep.mubr.f32.mxu0 %v1689_v0  ;;  %778 = vmatprep.mubr.f32.mxu1 %v1689_v0  ;;  %v228_v3 = vld [vmem:[%s195_s15 + $0x10] sm:$0xff]  ;;  %v230_v4 = vunpack.c.l.bf16 %v226_v1  ;;  %v232_v5 = vunpack.c.l.bf16 %v227_v2  ;;  %v1881_v6 = vcombine.high %v226_v1, %v227_v2  ;;  %v229_v7 = vld [vmem:[%s195_s15 + $0x18] sm:$0xff]  ;;  %v1885_v13 = vcombine.low %v226_v1, %v227_v2  ;;  %s1375_s19 = sshll.u32 %s1673_s12, 6  ;;  %s220_s26 = scalar_lea.vmem [#allocation7], %s1364_s21 }
  0x59   : > { %v234_v8 = vunpack.c.l.bf16 %v228_v3  ;;  %v238_v9 = vld [vmem:[%s186_s29] sm:$0x1]  ;;  %v239_v10 = vld [vmem:[%s186_s29 + $0x1] sm:$0x1]  ;;  %v236_v11 = vunpack.c.l.bf16 %v229_v7  ;;  %v1883_v12 = vcombine.high %v228_v3, %v229_v7  ;;  %v1887_v14 = vcombine.low %v228_v3, %v229_v7  ;;  %s1240_s30 = sshll.u32 %s220_s26, 4  ;;  %s1976_s8 = scalar_lea.hbm %s2029_s2, %s1375_s19  ;;  %s1978_s30 = int_to_ptr.vmem [resolvable:$true] %s1240_s30 }
  0x5a   : > { %1377 = vmatprep.subr.bf16.mxu0 %v1881_v6  ;;  %v1890_v15 = vsub.f32 %v230_v4, %v230_v4  ;;  %v1892_v16 = vsub.f32 %v232_v5, %v232_v5  ;;  %v242_v18 = vsel %vm240_vm0, %v238_v9, 0  ;;  %v712_v21 = vsel %vm240_vm0, %v239_v10, 0  ;;  %s1224_s16 = scalar_lea.sflag [#allocation4], %s1865_s6  ;;  %s1595_s18 = scalar_lea.vmem %s1978_s30, 64 }
  0x5b   : > { %v1894_v17 = vsub.f32 %v234_v8, %v234_v8  ;;  %1401 = vmatprep.subr.bf16.mxu1 %v1883_v12  ;;  %v1898_v19 = vsub.f32 %v236_v11, %v236_v11  ;;  %1379 = vmatpush1.bf16.msra.mxu0 %v1885_v13  ;;  %v1901_v20 = vand.u32 4294901760, %v242_v18  ;;  %v231_v22 = vunpack.c.h.bf16 %v226_v1  ;;  %p1596_p0 = scmp.ne.s32.totalorder %s1978_s30, %s1595_s18  ;;  %p2040_p3 = scmp.ne.s32.totalorder %s2034_s22, 0 }
  0x5c   : > { %1403 = vmatpush1.bf16.msra.mxu1 %v1887_v14  ;;  %v1905_v23 = vand.u32 4294901760, %v712_v21  ;;  %v233_v24 = vunpack.c.h.bf16 %v227_v2  ;;  %v235_v25 = vunpack.c.h.bf16 %v228_v3  ;;  %v237_v26 = vunpack.c.h.bf16 %v229_v7  ;;  %s1691_s12 = smov [#allocation7]  }
  0x5d   : > { %v1908_v27 = vsub.f32 %v242_v18, %v1901_v20  ;;  %v320_v28 = vsub.f32 %v231_v22, %v231_v22  ;;  %v326_v29 = vand.u32 4294901760, %v1890_v15  ;;  %v336_v30 = vand.u32 4294901760, %v1892_v16  ;;  %p1597_p11 = pnand %p1596_p0, %p2040_p3  ;;  %s1599_s20 = sshll.u32 %s1691_s12, 4  ;;  %s1600_s20 = int_to_ptr.vmem [resolvable:$false] %s1599_s20 }
  0x5e   : > { %v1913_v31 = vsub.f32 %v712_v21, %v1905_v23  ;;  %v330_v32 = vsub.f32 %v233_v24, %v233_v24  ;;  %v790_v33 = vsub.f32 %v235_v25, %v235_v25  ;;  %v800_v34 = vsub.f32 %v237_v26, %v237_v26  ;;  %s1601_s4 = scalar_lea.vmem %s1600_s20, 128  ;;  %p1602_p7 = scmp.lt.s32.totalorder %s1978_s30, %s1600_s20 }
  0x5f   : > { %v311_v35 = vand.u32 4294901760, %v1908_v27  ;;  %v321_v36 = vand.u32 4294901760, %v320_v28  ;;  %v327_v37 = vsub.f32 %v1890_v15, %v326_v29  ;;  %v337_v38 = vsub.f32 %v1892_v16, %v336_v30  ;;  %p1598_p13 = pneg %p1597_p11  ;;  %p1603_p10 = scmp.lt.s32.totalorder %s1601_s4, %s1595_s18 }
  0x60   : > { %v781_v39 = vand.u32 4294901760, %v1913_v31  ;;  %v331_v40 = vand.u32 4294901760, %v330_v32  ;;  %v791_v41 = vand.u32 4294901760, %v790_v33  ;;  %v801_v42 = vand.u32 4294901760, %v800_v34 }
  0x61   : > { %v312_v43 = vsub.f32 %v1908_v27, %v311_v35  ;;  %v322_v44 = vsub.f32 %v320_v28, %v321_v36  ;;  %v328_v45 = vand.u32 4294901760, %v327_v37  ;;  %v338_v46 = vand.u32 4294901760, %v337_v38  ;;  %p1604_p12 = por %p1603_p10, %p1602_p7 }
  0x62   : > { %v782_v47 = vsub.f32 %v1913_v31, %v781_v39  ;;  %v332_v48 = vsub.f32 %v330_v32, %v331_v40  ;;  %v792_v49 = vsub.f32 %v790_v33, %v791_v41  ;;  %v802_v50 = vsub.f32 %v800_v34, %v801_v42 }
  0x63   : > { %v313_v51 = vand.u32 4294901760, %v312_v43  ;;  %v323_v52 = vand.u32 4294901760, %v322_v44  ;;  %v796_v53 = vand.u32 4294901760, %v1894_v17  ;;  %v1382_v58 = vpack.c.bf16 %v338_v46, %v328_v45  ;;  %p1605_p9 = pnand %p1604_p12, %p1598_p13 }
  0x64   : > { %v783_v54 = vand.u32 4294901760, %v782_v47  ;;  %v333_v55 = vand.u32 4294901760, %v332_v48  ;;  %v793_v56 = vand.u32 4294901760, %v792_v49  ;;  %v803_v57 = vand.u32 4294901760, %v802_v50 }
  0x65   : > { %314 = vmatmul.mubr.f32.vlgmr.msra.gmra.mrb[0].mxu0 %v313_v51  ;;  %v797_v59 = vsub.f32 %v1894_v17, %v796_v53  ;;  %v806_v60 = vand.u32 4294901760, %v1898_v19  ;;  %v1384_v63 = vpack.c.bf16 %v330_v32, %v320_v28  ;;  %v1408_v4 = vpack.c.bf16 %v800_v34, %v790_v33 }
  0x66   : > { %784 = vmatmul.mubr.f32.vlgmr.msra.gmra.mrb[0].mxu1 %v783_v54  ;;  %v1380_v61 = vpack.c.bf16 %v333_v55, %v323_v52  ;;  %v1404_v62 = vpack.c.bf16 %v803_v57, %v793_v56  ;;  %400 = vmatprep.mubr.f32.mxu0 %v1689_v0  ;;  %v1386_v5 = vpack.c.bf16 %v1892_v16, %v1890_v15 }
  0x67   : > { %v798_v1 = vand.u32 4294901760, %v797_v59  ;;  %v807_v2 = vsub.f32 %v1898_v19, %v806_v60  ;;  %870 = vmatprep.mubr.f32.mxu1 %v1689_v0  ;;  %v1410_v8 = vpack.c.bf16 %v1898_v19, %v1894_v17  ;;  %v1392_v9 = vpack.c.bf16 %v331_v40, %v321_v36 }
  0x68   : > { %1381 = vmatprep.subr.bf16.mxu0 %v1380_v61  ;;  %1405 = vmatprep.subr.bf16.mxu1 %v1404_v62  ;;  %v1416_v10 = vpack.c.bf16 %v801_v42, %v791_v41  ;;  %v1394_v11 = vpack.c.bf16 %v336_v30, %v326_v29  ;;  %v1418_v17 = vpack.c.bf16 %v806_v60, %v796_v53 }
  0x69   : > { %1383 = vmatpush1.bf16.msra.mxu0 %v1382_v58  ;;  %v808_v3 = vand.u32 4294901760, %v807_v2 }
  0x6a   : > { %1385 = vmatprep.subr.bf16.mxu0 %v1384_v63 }
  0x6b   : > { %v1406_v7 = vpack.c.bf16 %v808_v3, %v798_v1 }
  0x6d   : > { %1407 = vmatpush1.bf16.msra.mxu1 %v1406_v7  ;;  %402 = vmatmul.mubr.f32.vlgmr.msra.gmra.mrb[0].mxu0 %v1901_v20 }
  0x6e   : > { %1409 = vmatprep.subr.bf16.mxu1 %v1408_v4  ;;  %1387 = vmatpush1.bf16.msra.mxu0 %v1386_v5 }
  0x6f   : > { %476 = vmatprep.mubr.f32.mxu0 %v1689_v0  ;;  %1389 = vmatprep.subr.bf16.mxu0 %v1881_v6 }
  0x70   : > { %872 = vmatmul.mubr.f32.vlgmr.msra.gmra.mrb[0].mxu1 %v1905_v23 }
  0x71   : > { %1411 = vmatpush1.bf16.msra.mxu1 %v1410_v8  ;;  %946 = vmatprep.mubr.f32.mxu1 %v1689_v0 }
  0x72   : > { %1413 = vmatprep.subr.bf16.mxu1 %v1883_v12 }
  0x75   : > { %479 = vmatmul.mubr.f32.vlgmr.msra.gmra.mrb[0].mxu0 %v1908_v27 }
  0x76   : > { %1391 = vmatpush1.bf16.msra.mxu0 %v1885_v13  ;;  %549 = vmatprep.mubr.f32.mxu0 %v1689_v0 }
  0x77   : > { %1393 = vmatprep.subr.bf16.mxu0 %v1392_v9 }
  0x78   : > { %949 = vmatmul.mubr.f32.vlgmr.msra.gmra.mrb[0].mxu1 %v1913_v31 }
  0x79   : > { %1415 = vmatpush1.bf16.msra.mxu1 %v1887_v14  ;;  %1019 = vmatprep.mubr.f32.mxu1 %v1689_v0 }
  0x7a   : > { %1417 = vmatprep.subr.bf16.mxu1 %v1416_v10 }
  0x7d   : > { %553 = vmatmul.mubr.f32.vlgmr.msra.gmra.mrb[0].mxu0 %v311_v35 }
  0x7e   : > { %1395 = vmatpush1.bf16.msra.mxu0 %v1394_v11  ;;  %631 = vmatprep.mubr.f32.mxu0 %v1689_v0 }
  0x7f   : > { %1397 = vmatprep.subr.bf16.mxu0 %v1881_v6  ;;  %v1690_v6 = vmov 1966171168  }
  0x80   : > { %1023 = vmatmul.mubr.f32.vlgmr.msra.gmra.mrb[0].mxu1 %v781_v39  ;;  %v1187_v15 = vunpack.c.l.s4 %v1690_v6 }
  0x81   : > { %1419 = vmatpush1.bf16.msra.mxu1 %v1418_v17  ;;  %1101 = vmatprep.mubr.f32.mxu1 %v1689_v0 }
  0x82   : > { %1421 = vmatprep.subr.bf16.mxu1 %v1883_v12  ;;  %v1189_v12 = vlaneseq  ;;  %v1188_v16 = vunpack.c.0.s8 %v1187_v15 }
  0x84   : > { %v1190_v18 = vshrl.u32 %v1189_v12, 7  ;;  %vm1219_vm1 = vcmp.lt.s32.totalorder %v1189_v12, 256 }
  0x85   : > { %633 = vmatmul.mubr.f32.vlgmr.msra.gmra.mrb[0].mxu0 %v1901_v20 }
  0x86   : > { %1399 = vmatpush1.bf16.msra.mxu0 %v1885_v13  ;;  %703 = vmatprep.mubr.f32.mxu0 %v1689_v0  ;;  %v1191_v19 = vsub.s32 %v1188_v16, %v1190_v18 }
  0x88   : > { %1103 = vmatmul.mubr.f32.vlgmr.msra.gmra.mrb[0].mxu1 %v1905_v23 }
  0x89   : > { %1423 = vmatpush1.bf16.msra.mxu1 %v1887_v14  ;;  %1173 = vmatprep.mubr.f32.mxu1 %v1689_v0 }
  0x8d   : > { %705 = vmatmul.mubr.f32.vlgmr.msra.gmra.mrb[0].mxu0 %v1901_v20 }
  0x90   : > { %1175 = vmatmul.mubr.f32.vlgmr.msra.gmra.mrb[0].mxu1 %v1905_v23 }
 0x160   : > { %v706_v13 = vpop.f32.mrb[0].mxu0 }
 0x161   : > { %v708_v21 = vpop.f32.mrb[1].mxu0 }
 0x162   : > { %v1185_v22 = vcombine.low %v706_v13, %v708_v21 }
 0x163   : > { %v1176_v24 = vpop.f32.mrb[0].mxu1 }
 0x164   : > { %v1192_v14 = vrot.slane %v1185_v22, %v1191_v19  ;;  %v1178_v25 = vpop.f32.mrb[1].mxu1 }
 0x165   : > { %v1200_v0 = vcombine.low %v1176_v24, %v1178_v25 }
 0x166   : > { %v1199_v20 = vrot.slane %v1192_v14, %v1191_v19 }
 0x167   : > { %v1207_v23 = vrot.slane %v1200_v0, %v1191_v19 }
 0x168   : > { %1221 = vst.msk [vmem:[%s220_s26] sm:$0x3] %vm1219_vm1, %v1199_v20 }
 0x169   : > { %v1214_v26 = vrot.slane %v1207_v23, %v1191_v19 }
 0x16b   : > { %1222 = vst.msk [vmem:[%s220_s26 + $0x2] sm:$0x3] %vm1219_vm1, %v1214_v26 }
 0x16c   : > { %1608 = shalt.err (!%p1605_p9)
}
 0x16d   : > { %s1609_s27 = scalar_lea.hbm %s1976_s8, 64  ;;  %s1613_s25 = scalar_lea.hbm %s2029_s2, 128 }
 0x16e   : > { %p1610_p1 = scmp.ne.s32.totalorder %s1976_s8, %s1609_s27  ;;  %p1614_p5 = scmp.lt.u32.totalorder %s1976_s8, %s2029_s2 }
 0x16f   : > { %p1615_p4 = scmp.lt.u32.totalorder %s1613_s25, %s1609_s27  ;;  %p1617_p0 = scmp.lt.u32.totalorder %s1609_s27, %s1976_s8 }
 0x170   : > { %p1611_p6 = pnand %p1610_p1, %p2040_p3 }
 0x171   : > { %p1616_p8 = por %p1615_p4, %p1614_p5 }
 0x172   : > { %p1612_p2 = pneg %p1611_p6 }
 0x173   : > { %p1618_p11 = por %p1617_p0, %p1616_p8 }
 0x175   : > { %p1619_p13 = pnand %p1618_p11, %p1612_p2 }
 0x177   : > { %1622 = shalt.err (!%p1619_p13)
}
 0x178   : > { %s1692_s21 = smov 32   ;;  %s1693_s19 = smov 2  }
 0x179   : > { %1460 = dma.vmem_to_hbm [thread:$0]  (%p2040_p3), %s1978_s30, 64, %s1976_s8, %s1224_s16, %s1692_s21, %s1692_s21, %s1693_s19  }
 0x17a PF: > { %s1255_s26 = sand.u32 1, %s1661_s9   ;;  %p2041_p7 = scmp.ne.s32.totalorder %s2035_s24, 0 }
 0x17b   : > { %p2042_p10 = scmp.ge.s32.totalorder %s1681_s14, 2  ;;  %s1256_s3 = scalar_lea.sflag [#allocation4], %s1255_s26 }
 0x17d   : > { %p1470_p12 = pnand %p2042_p10, %p2041_p7 }
 0x17f   : > { %1656 = dma.done.wait (!%p1470_p12), %s1256_s3, 64  }
 0x180   : > { %1658 = vsyncadd (!%p1470_p12), %s1256_s3, 4294967232  ;;  %s21_s14 = sadd.s32 1, %s1681_s14   ;;  %s2043_s9 = smov %s1665_s10 }
 0x181   : > { %p18_p9 = scmp.ge.s32.totalorder %s21_s14, 4   ;;  %s2044_s10 = smov %s1669_s11 }
 0x182   : > { %s2045_s11 = smov %s1765_s23  ;;  %s2046_s12 = smov %s1677_s13 }
 0x183   : > { %s2047_s13 = smov %s2049_s17  ;;  %20 = sbr.rel (!%p18_p9) target bundleno = 8 (0x8), region = 86 }
 0x18a   :  { %1261 = vsyncpa [#allocation3], 1 }
 0x18b   :  { %1263 = vsyncpa [#allocation3 + $0x1], 1 }
 0x18c   :  { %1264 = vsyncpa [#allocation6], 1 }
 0x18d   :  { %1266 = vsyncpa [#allocation6 + $0x1], 1 }
 0x18e   :  { %1267 = vsyncpa [#allocation4], 1 }
 0x18f   :  { %1269 = vsyncpa [#allocation4 + $0x1], 1 }

</bundles_post_ra>
